<compile_context>
chip_gen: v7x
topology: tpu7x:2x2x1
jax: 0.10.0
libtpu: 0.0.40
codegen_flags: <defaults>
</compile_context>

<pallas_src>
import functools

import jax
import jax.numpy as jnp
from jax.experimental import pallas as pl
from jax.experimental.pallas import tpu as pltpu

RES_K = 3      # residual conv kernel size (replication pad = 1)
SA_K = 7       # SpatialAttention kernel size
SA_PAD = 3     # zero padding of the 7x7 conv


def _round_up(n, m):
    return ((n + m - 1) // m) * m


# ---------------------------------------------------------------------------
# Kernel A: residual = ReLU(conv3x3 + bias) as one MXU matmul on im2col
# patches, fused ChannelAttention MLP, channelrefined = r * CA, and the
# channel-wise mean/max maps needed by SpatialAttention.
# grid = (B,); everything is lane-dense with H*W on the lane axis.
# ---------------------------------------------------------------------------
def conv_ca_kernel(p_ref, wm_ref, b_ref, w1t_ref, w2_ref, cr_ref, pooled_ref,
                   *, inv_hw, inv_c):
    patches = p_ref[...][0].astype(jnp.float32)          # (9*Cin, H*W)
    wm = wm_ref[...].astype(jnp.float32)                  # (Cout, 9*Cin)

    # --- residual feature: one MXU matmul + bias + ReLU ----------------------
    r = jnp.dot(wm, patches, preferred_element_type=jnp.float32,
                precision=jax.lax.Precision.HIGHEST)      # (Cout, H*W)
    r = jnp.maximum(r + b_ref[...], 0.0)                  # (Cout,1) bias broadcast

    # --- ChannelAttention (fused epilogue, vectorized) ------------------------
    avg_c = jnp.sum(r, axis=1, keepdims=True) * inv_hw    # (Cout, 1)  avg pool
    max_c = jnp.max(r, axis=1, keepdims=True)             # (Cout, 1)  max pool
    w1t = w1t_ref[...].astype(jnp.float32)                # (Cout, Cmid) = fc1.T
    w2 = w2_ref[...].astype(jnp.float32)                  # (Cout, Cmid) = fc2

    def mlp(v):                                           # (Cout,1) -> (Cout,1)
        h = jnp.maximum(jnp.sum(w1t * v, axis=0, keepdims=True), 0.0)  # (1,Cmid)
        return jnp.sum(w2 * h, axis=1, keepdims=True)                  # (Cout,1)

    ca = jax.nn.sigmoid(mlp(avg_c) + mlp(max_c))          # (Cout, 1)

    # --- channelrefined + channel-wise mean/max for SpatialAttention ----------
    cr = r * ca                                           # (Cout, H*W)
    cr_ref[...] = cr[None].astype(cr_ref.dtype)
    pooled_ref[0, 0:1, :] = (jnp.sum(cr, axis=0, keepdims=True)
                             * inv_c).astype(pooled_ref.dtype)          # mean map
    pooled_ref[0, 1:2, :] = jnp.max(cr, axis=0, keepdims=True
                                    ).astype(pooled_ref.dtype)          # max map


# ---------------------------------------------------------------------------
# Kernel B: SpatialAttention 7x7 (2 -> 1) conv + sigmoid on the pooled maps.
# Zero-padded maps live in a tile-aligned VMEM scratch; the 7 kw lane shifts
# are hoisted (14 lane-shifted slices instead of 98); weights are SMEM scalars.
# ---------------------------------------------------------------------------
def spatial_attention_kernel(pooled_ref, wsa_ref, sa_ref, pad_ref):
    H, W = pooled_ref.shape[2], pooled_ref.shape[3]
    pad_ref[...] = jnp.zeros(pad_ref.shape, pad_ref.dtype)
    pad_ref[:, SA_PAD:SA_PAD + H, SA_PAD:SA_PAD + W] = (
        pooled_ref[...][0].astype(jnp.float32))
    pad = pad_ref[...]                                    # (2, Hp, Wp)

    acc = jnp.zeros((H, W), jnp.float32)
    for kw in range(SA_K):                                # 14 hoisted lane slices
        col_a = pad[0, :, kw:kw + W]                      # (Hp, W) mean map
        col_m = pad[1, :, kw:kw + W]                      # (Hp, W) max  map
        for kh in range(SA_K):                            # cheap sublane slices
            acc = acc + col_a[kh:kh + H, :] * wsa_ref[kh * SA_K + kw]
            acc = acc + col_m[kh:kh + H, :] * wsa_ref[SA_K * SA_K + kh * SA_K + kw]
    sa_ref[...] = jax.nn.sigmoid(acc)[None, None].astype(sa_ref.dtype)


# ---------------------------------------------------------------------------
# Kernel C: refined = channelrefined * SA, lane-dense (H*W on the lane axis).
# ---------------------------------------------------------------------------
def refine_kernel(cr_ref, sa_ref, o_ref):
    o_ref[...] = (cr_ref[...].astype(jnp.float32)
                  * sa_ref[...].astype(jnp.float32)).astype(o_ref.dtype)


# ---------------------------------------------------------------------------
# Wrapper
# ---------------------------------------------------------------------------
def residual_block(x, w_res, b_res, w1, w2, w_sa, *, c_tile=None):
    """x: (B, Cin, H, W); w_res: (Cout, Cin, 3, 3); b_res: (Cout,);
    w1: (Cout//16, Cout); w2: (Cout, Cout//16); w_sa: (1, 2, 7, 7)."""
    B, Cin, H, W = x.shape
    Cout = w_res.shape[0]
    Cmid = w1.shape[0]
    HW = H * W
    if c_tile is None:
        c_tile = Cout
    assert Cout % c_tile == 0 and (c_tile % 8 == 0 or c_tile == Cout)
    n_ct = Cout // c_tile

    # ---- wrapper-side layout plumbing (no FLOPs) -----------------------------
    # Replication pad + im2col so the 3x3 conv becomes one MXU matmul with
    # H*W on the lane axis (lane-dense, unmasked stores even when W < 128).
    xp = jnp.pad(x, ((0, 0), (0, 0), (1, 1), (1, 1)), mode="edge")
    patches = jnp.concatenate(
        [xp[:, :, kh:kh + H, kw:kw + W].reshape(B, Cin, HW)
         for kh in range(RES_K) for kw in range(RES_K)],
        axis=1)                                            # (B, 9*Cin, H*W)
    w_mat = jnp.transpose(w_res, (0, 2, 3, 1)).reshape(Cout, RES_K * RES_K * Cin)
    b_col = b_res.reshape(Cout, 1)
    w1t = jnp.transpose(w1)                                # (Cout, Cmid)

    # ---- Kernel A: conv + ReLU + ChannelAttention + channel refine -----------
    cr, pooled = pl.pallas_call(
        functools.partial(conv_ca_kernel, inv_hw=1.0 / float(HW),
                          inv_c=1.0 / float(Cout)),
        out_shape=(
            jax.ShapeDtypeStruct((B, Cout, HW), jnp.float32),
            jax.ShapeDtypeStruct((B, 2, HW), jnp.float32),
        ),
        grid_spec=pltpu.PrefetchScalarGridSpec(
            num_scalar_prefetch=0,
            grid=(B,),
            in_specs=[
                pl.BlockSpec((1, RES_K * RES_K * Cin, HW), lambda b: (b, 0, 0)),
                pl.BlockSpec((Cout, RES_K * RES_K * Cin), lambda b: (0, 0)),
                pl.BlockSpec((Cout, 1), lambda b: (0, 0)),
                pl.BlockSpec((Cout, Cmid), lambda b: (0, 0)),
                pl.BlockSpec((Cout, Cmid), lambda b: (0, 0)),
            ],
            out_specs=[
                pl.BlockSpec((1, Cout, HW), lambda b: (b, 0, 0)),
                pl.BlockSpec((1, 2, HW), lambda b: (b, 0, 0)),
            ],
        ),
        compiler_params=pltpu.CompilerParams(
            dimension_semantics=("parallel",),
            vmem_limit_bytes=48 * 1024 * 1024,
        ),
        cost_estimate=pl.CostEstimate(
            flops=2 * B * Cout * RES_K * RES_K * Cin * HW + 8 * B * Cout * Cmid,
            transcendentals=B * Cout,
            bytes_accessed=4 * B * HW * (RES_K * RES_K * Cin + Cout + 2),
        ),
    )(patches, w_mat, b_col, w1t, w2)

    # ---- Kernel B: SpatialAttention 7x7 conv + sigmoid ------------------------
    pooled_2d = pooled.reshape(B, 2, H, W)                 # tiny wrapper reshape
    hp = _round_up(H + 2 * SA_PAD, 8)
    wp = _round_up(W + 2 * SA_PAD, 128)
    sa = pl.pallas_call(
        spatial_attention_kernel,
        out_shape=jax.ShapeDtypeStruct((B, 1, H, W), jnp.float32),
        grid_spec=pltpu.PrefetchScalarGridSpec(
            num_scalar_prefetch=0,
            grid=(B,),
            in_specs=[
                pl.BlockSpec((1, 2, H, W), lambda b: (b, 0, 0, 0)),
                pl.BlockSpec(memory_space=pltpu.MemorySpace.SMEM),  # 7x7x2 weights
            ],
            out_specs=pl.BlockSpec((1, 1, H, W), lambda b: (b, 0, 0, 0)),
            scratch_shapes=[pltpu.VMEM((2, hp, wp), jnp.float32)],
        ),
        compiler_params=pltpu.CompilerParams(
            dimension_semantics=("parallel",),
            vmem_limit_bytes=32 * 1024 * 1024,
        ),
        cost_estimate=pl.CostEstimate(
            flops=4 * SA_K * SA_K * B * HW,
            transcendentals=B * HW,
            bytes_accessed=4 * B * HW * 3,
        ),
    )(pooled_2d, w_sa.reshape(-1))

    # ---- Kernel C: refined = channelrefined * SA (lane-dense) -----------------
    # TODO(synk): for large C*H*W this could be fused into kernel B to save one
    # HBM read of `cr` (requires an in-kernel (H,W)->(H*W) relayout of SA).
    refined = pl.pallas_call(
        refine_kernel,
        out_shape=jax.ShapeDtypeStruct((B, Cout, HW), x.dtype),
        grid_spec=pltpu.PrefetchScalarGridSpec(
            num_scalar_prefetch=0,
            grid=(B, n_ct),
            in_specs=[
                pl.BlockSpec((1, c_tile, HW), lambda b, k: (b, k, 0)),
                pl.BlockSpec((1, 1, HW), lambda b, k: (b, 0, 0)),
            ],
            out_specs=pl.BlockSpec((1, c_tile, HW), lambda b, k: (b, k, 0)),
        ),
        compiler_params=pltpu.CompilerParams(
            dimension_semantics=("parallel", "parallel"),
            vmem_limit_bytes=48 * 1024 * 1024,
        ),
        cost_estimate=pl.CostEstimate(
            flops=B * Cout * HW,
            transcendentals=0,
            bytes_accessed=4 * 2 * B * Cout * HW,
        ),
    )(cr, sa.reshape(B, 1, HW))

    return refined.reshape(B, Cout, H, W)


# ---------------------------------------------------------------------------
# Pure-JAX reference mirroring the PyTorch forward.
# ---------------------------------------------------------------------------
def residual_block_ref(x, w_res, b_res, w1, w2, w_sa):
    hi = jax.lax.Precision.HIGHEST
    xp = jnp.pad(x, ((0, 0), (0, 0), (1, 1), (1, 1)), mode="edge")
    r = jax.lax.conv_general_dilated(
        xp, w_res, (1, 1), "VALID",
        dimension_numbers=("NCHW", "OIHW", "NCHW"), precision=hi)
    r = jax.nn.relu(r + b_res[None, :, None, None])
    avg = jnp.mean(r, axis=(2, 3))
    mx = jnp.max(r, axis=(2, 3))

    def mlp(v):
        h = jax.nn.relu(jnp.dot(v, w1.T, precision=hi))
        return jnp.dot(h, w2.T, precision=hi)

    ca = jax.nn.sigmoid(mlp(avg) + mlp(mx))               # (B, Cout)
    cr = r * ca[:, :, None, None]
    am = jnp.mean(cr, axis=1, keepdims=True)
    mm = jnp.max(cr, axis=1, keepdims=True)
    cat = jnp.concatenate([am, mm], axis=1)
    sa = jax.lax.conv_general_dilated(
        cat, w_sa, (1, 1), ((SA_PAD, SA_PAD), (SA_PAD, SA_PAD)),
        dimension_numbers=("NCHW", "OIHW", "NCHW"), precision=hi)
    sa = jax.nn.sigmoid(sa)
    return cr * sa


if __name__ == "__main__":
    key = jax.random.PRNGKey(0)
    kx, kw0, kb0, kw1, kw2, kws = jax.random.split(key, 6)

    B, Cin, Cout, H, W = 2, 4, 32, 16, 16     # Cout >= 16 so that Cout//16 >= 1
    Cmid = Cout // 16

    def uinit(k, shape, fan_in):
        bound = 1.0 / (float(fan_in) ** 0.5)
        return jax.random.uniform(k, shape, jnp.float32, -bound, bound)

    x = jax.random.normal(kx, (B, Cin, H, W), dtype=jnp.float32)
    w_res = uinit(kw0, (Cout, Cin, RES_K, RES_K), Cin * RES_K * RES_K)
    b_res = uinit(kb0, (Cout,), Cin * RES_K * RES_K)
    w1 = uinit(kw1, (Cmid, Cout), Cout)                      # ChannelAttention fc1
    w2 = uinit(kw2, (Cout, Cmid), Cmid)                      # ChannelAttention fc2
    w_sa = uinit(kws, (1, 2, SA_K, SA_K), 2 * SA_K * SA_K)   # SpatialAttention conv

    out = jax.block_until_ready(residual_block(x, w_res, b_res, w1, w2, w_sa))
    ref = jax.block_until_ready(residual_block_ref(x, w_res, b_res, w1, w2, w_sa))

    assert out.shape == (B, Cout, H, W)
    err = float(jnp.max(jnp.abs(out - ref)))
    assert jnp.allclose(out, ref, atol=2e-3, rtol=2e-3), (
        f"mismatch vs reference, max abs err = {err}")

    print("KERNEL_OK")
</pallas_src>

<mosaic_0001>
module attributes {stable_mosaic.version = 11 : i64} {
  func.func @conv_ca_kernel(%arg0: i32, %arg1: memref<1x36x256xf32, #tpu.memory_space<vmem>>, %arg2: memref<32x36xf32, #tpu.memory_space<vmem>>, %arg3: memref<32x1xf32, #tpu.memory_space<vmem>>, %arg4: memref<32x2xf32, #tpu.memory_space<vmem>>, %arg5: memref<32x2xf32, #tpu.memory_space<vmem>>, %arg6: memref<1x32x256xf32, #tpu.memory_space<vmem>>, %arg7: memref<1x2x256xf32, #tpu.memory_space<vmem>>) attributes {dimension_semantics = [#tpu.dimension_semantics<parallel>], iteration_bounds = array<i64: 2>, scalar_prefetch = 0 : i64, scratch_operands = 0 : i64, tpu.core_type = #tpu.core_type<tc>, window_params = [{transform_indices = @transform_0, window_bounds = array<i64: 1, 36, 256>}, {pipeline_mode = #tpu.pipeline_mode<synchronous>, transform_indices = @transform_1, window_bounds = array<i64: 32, 36>}, {pipeline_mode = #tpu.pipeline_mode<synchronous>, transform_indices = @transform_2, window_bounds = array<i64: 32, 1>}, {pipeline_mode = #tpu.pipeline_mode<synchronous>, transform_indices = @transform_3, window_bounds = array<i64: 32, 2>}, {pipeline_mode = #tpu.pipeline_mode<synchronous>, transform_indices = @transform_4, window_bounds = array<i64: 32, 2>}, {transform_indices = @transform_5, window_bounds = array<i64: 1, 32, 256>}, {transform_indices = @transform_6, window_bounds = array<i64: 1, 2, 256>}]} {
    %c0 = arith.constant 0 : index
    %c0_0 = arith.constant 0 : index
    %c0_1 = arith.constant 0 : index
    %0 = vector.load %arg1[%c0, %c0_0, %c0_1] : memref<1x36x256xf32, #tpu.memory_space<vmem>>, vector<1x36x256xf32>
    %1 = vector.shape_cast %0 : vector<1x36x256xf32> to vector<36x256xf32>
    %c0_2 = arith.constant 0 : index
    %c0_3 = arith.constant 0 : index
    %2 = vector.load %arg2[%c0_2, %c0_3] : memref<32x36xf32, #tpu.memory_space<vmem>>, vector<32x36xf32>
    %cst = arith.constant dense<0.000000e+00> : vector<32x256xf32>
    %3 = tpu.matmul %2, %1, %cst {dimension_numbers = #tpu.dot_dimension_numbers<[1], [0], [0], [1], [0, 0, 1, 1], [], []>, precision = #tpu.contract_precision<fp32>} : vector<32x36xf32>, vector<36x256xf32>, vector<32x256xf32> -> vector<32x256xf32>
    %c0_4 = arith.constant 0 : index
    %c0_5 = arith.constant 0 : index
    %4 = vector.load %arg3[%c0_4, %c0_5] : memref<32x1xf32, #tpu.memory_space<vmem>>, vector<32x1xf32>
    %5 = vector.broadcast %4 : vector<32x1xf32> to vector<32x256xf32>
    %6 = arith.addf %3, %5 : vector<32x256xf32>
    %cst_6 = arith.constant 0.000000e+00 : f32
    %7 = vector.broadcast %cst_6 : f32 to vector<32x256xf32>
    %8 = arith.maximumf %6, %7 : vector<32x256xf32>
    %cst_7 = arith.constant dense<0.000000e+00> : vector<32xf32>
    %9 = vector.multi_reduction <add>, %8, %cst_7 [1] : vector<32x256xf32> to vector<32xf32>
    %10 = vector.shape_cast %9 : vector<32xf32> to vector<32x1xf32>
    %cst_8 = arith.constant 3.906250e-03 : f32
    %11 = vector.broadcast %cst_8 : f32 to vector<32x1xf32>
    %12 = arith.mulf %10, %11 : vector<32x1xf32>
    %cst_9 = arith.constant dense<0xFF800000> : vector<32xf32>
    %13 = vector.multi_reduction <maximumf>, %8, %cst_9 [1] : vector<32x256xf32> to vector<32xf32>
    %14 = vector.shape_cast %13 : vector<32xf32> to vector<32x1xf32>
    %c0_10 = arith.constant 0 : index
    %c0_11 = arith.constant 0 : index
    %15 = vector.load %arg4[%c0_10, %c0_11] : memref<32x2xf32, #tpu.memory_space<vmem>>, vector<32x2xf32>
    %c0_12 = arith.constant 0 : index
    %c0_13 = arith.constant 0 : index
    %16 = vector.load %arg5[%c0_12, %c0_13] : memref<32x2xf32, #tpu.memory_space<vmem>>, vector<32x2xf32>
    %17 = vector.broadcast %12 : vector<32x1xf32> to vector<32x2xf32>
    %18 = arith.mulf %15, %17 : vector<32x2xf32>
    %cst_14 = arith.constant dense<0.000000e+00> : vector<2xf32>
    %19 = vector.multi_reduction <add>, %18, %cst_14 [0] : vector<32x2xf32> to vector<2xf32>
    %20 = vector.shape_cast %19 : vector<2xf32> to vector<1x2xf32>
    %cst_15 = arith.constant 0.000000e+00 : f32
    %21 = vector.broadcast %cst_15 : f32 to vector<1x2xf32>
    %22 = arith.maximumf %20, %21 : vector<1x2xf32>
    %23 = vector.broadcast %22 : vector<1x2xf32> to vector<32x2xf32>
    %24 = arith.mulf %16, %23 : vector<32x2xf32>
    %cst_16 = arith.constant dense<0.000000e+00> : vector<32xf32>
    %25 = vector.multi_reduction <add>, %24, %cst_16 [1] : vector<32x2xf32> to vector<32xf32>
    %26 = vector.shape_cast %25 : vector<32xf32> to vector<32x1xf32>
    %27 = vector.broadcast %14 : vector<32x1xf32> to vector<32x2xf32>
    %28 = arith.mulf %15, %27 : vector<32x2xf32>
    %cst_17 = arith.constant dense<0.000000e+00> : vector<2xf32>
    %29 = vector.multi_reduction <add>, %28, %cst_17 [0] : vector<32x2xf32> to vector<2xf32>
    %30 = vector.shape_cast %29 : vector<2xf32> to vector<1x2xf32>
    %cst_18 = arith.constant 0.000000e+00 : f32
    %31 = vector.broadcast %cst_18 : f32 to vector<1x2xf32>
    %32 = arith.maximumf %30, %31 : vector<1x2xf32>
    %33 = vector.broadcast %32 : vector<1x2xf32> to vector<32x2xf32>
    %34 = arith.mulf %16, %33 : vector<32x2xf32>
    %cst_19 = arith.constant dense<0.000000e+00> : vector<32xf32>
    %35 = vector.multi_reduction <add>, %34, %cst_19 [1] : vector<32x2xf32> to vector<32xf32>
    %36 = vector.shape_cast %35 : vector<32xf32> to vector<32x1xf32>
    %37 = arith.addf %26, %36 : vector<32x1xf32>
    %38 = arith.negf %37 : vector<32x1xf32>
    %39 = math.exp %38 : vector<32x1xf32>
    %cst_20 = arith.constant 1.000000e+00 : f32
    %40 = vector.broadcast %cst_20 : f32 to vector<32x1xf32>
    %41 = arith.addf %40, %39 : vector<32x1xf32>
    %42 = arith.divf %40, %41 : vector<32x1xf32>
    %43 = vector.broadcast %42 : vector<32x1xf32> to vector<32x256xf32>
    %44 = arith.mulf %8, %43 : vector<32x256xf32>
    %45 = vector.shape_cast %44 : vector<32x256xf32> to vector<1x32x256xf32>
    %c0_21 = arith.constant 0 : index
    %c0_22 = arith.constant 0 : index
    %c0_23 = arith.constant 0 : index
    %46 = vector.load %arg6[%c0_21, %c0_22, %c0_23] : memref<1x32x256xf32, #tpu.memory_space<vmem>>, vector<1x32x256xf32>
    tpu.vector_store %arg6[%c0_21, %c0_22, %c0_23], %45 {strides = array<i32>} : memref<1x32x256xf32, #tpu.memory_space<vmem>>, vector<1x32x256xf32>,
    %cst_24 = arith.constant dense<0.000000e+00> : vector<256xf32>
    %47 = vector.multi_reduction <add>, %44, %cst_24 [0] : vector<32x256xf32> to vector<256xf32>
    %48 = vector.shape_cast %47 : vector<256xf32> to vector<1x256xf32>
    %cst_25 = arith.constant 3.125000e-02 : f32
    %49 = vector.broadcast %cst_25 : f32 to vector<1x256xf32>
    %50 = arith.mulf %48, %49 : vector<1x256xf32>
    %c0_26 = arith.constant 0 : index
    %c0_27 = arith.constant 0 : index
    %c0_28 = arith.constant 0 : index
    %51 = vector.load %arg7[%c0_26, %c0_27, %c0_28] : memref<1x2x256xf32, #tpu.memory_space<vmem>>, vector<1x1x256xf32>
    %52 = vector.shape_cast %51 : vector<1x1x256xf32> to vector<1x256xf32>
    %53 = vector.shape_cast %50 : vector<1x256xf32> to vector<1x1x256xf32>
    tpu.vector_store %arg7[%c0_26, %c0_27, %c0_28], %53 {strides = array<i32>} : memref<1x2x256xf32, #tpu.memory_space<vmem>>, vector<1x1x256xf32>,
    %cst_29 = arith.constant dense<0xFF800000> : vector<256xf32>
    %54 = vector.multi_reduction <maximumf>, %44, %cst_29 [0] : vector<32x256xf32> to vector<256xf32>
    %55 = vector.shape_cast %54 : vector<256xf32> to vector<1x256xf32>
    %c0_30 = arith.constant 0 : index
    %c1 = arith.constant 1 : index
    %c0_31 = arith.constant 0 : index
    %56 = vector.load %arg7[%c0_30, %c1, %c0_31] : memref<1x2x256xf32, #tpu.memory_space<vmem>>, vector<1x1x256xf32>
    %57 = vector.shape_cast %56 : vector<1x1x256xf32> to vector<1x256xf32>
    %58 = vector.shape_cast %55 : vector<1x256xf32> to vector<1x1x256xf32>
    tpu.vector_store %arg7[%c0_30, %c1, %c0_31], %58 {strides = array<i32>} : memref<1x2x256xf32, #tpu.memory_space<vmem>>, vector<1x1x256xf32>,
    return
  }
  func.func @transform_0(%arg0: i32) -> (i32, i32, i32) {
    %c0_i32 = arith.constant 0 : i32
    %c0_i32_0 = arith.constant 0 : i32
    %c0_i32_1 = arith.constant 0 : i32
    return %arg0, %c0_i32, %c0_i32_0 : i32, i32, i32
  }
  func.func @transform_1(%arg0: i32) -> (i32, i32) {
    %c0_i32 = arith.constant 0 : i32
    %c0_i32_0 = arith.constant 0 : i32
    %c0_i32_1 = arith.constant 0 : i32
    return %c0_i32, %c0_i32_0 : i32, i32
  }
  func.func @transform_2(%arg0: i32) -> (i32, i32) {
    %c0_i32 = arith.constant 0 : i32
    %c0_i32_0 = arith.constant 0 : i32
    %c0_i32_1 = arith.constant 0 : i32
    return %c0_i32, %c0_i32_0 : i32, i32
  }
  func.func @transform_3(%arg0: i32) -> (i32, i32) {
    %c0_i32 = arith.constant 0 : i32
    %c0_i32_0 = arith.constant 0 : i32
    %c0_i32_1 = arith.constant 0 : i32
    return %c0_i32, %c0_i32_0 : i32, i32
  }
  func.func @transform_4(%arg0: i32) -> (i32, i32) {
    %c0_i32 = arith.constant 0 : i32
    %c0_i32_0 = arith.constant 0 : i32
    %c0_i32_1 = arith.constant 0 : i32
    return %c0_i32, %c0_i32_0 : i32, i32
  }
  func.func @transform_5(%arg0: i32) -> (i32, i32, i32) {
    %c0_i32 = arith.constant 0 : i32
    %c0_i32_0 = arith.constant 0 : i32
    %c0_i32_1 = arith.constant 0 : i32
    return %arg0, %c0_i32, %c0_i32_0 : i32, i32, i32
  }
  func.func @transform_6(%arg0: i32) -> (i32, i32, i32) {
    %c0_i32 = arith.constant 0 : i32
    %c0_i32_0 = arith.constant 0 : i32
    %c0_i32_1 = arith.constant 0 : i32
    return %arg0, %c0_i32, %c0_i32_0 : i32, i32, i32
  }
}

</mosaic_0001>

<bundles_post_ra>
// kernel: tpu_custom_call.1
= control target key start
LH: loop header
LB: loop body
LE: loop exit
PB: predicated region body
PF: predicated region fallthrough
CT: control target
= control target key end

     0   :  { %12 = vsyncpa [#allocation3], 0  ;;  %s2137_s0 = inlined_call_operand.vmem [shape: f32[2,36,256], index: 0, kind: input, shape index: {}]   ;;  %s2138_s1 = inlined_call_operand.vmem [shape: f32[32,36], index: 1, kind: input, shape index: {}]   ;;  %s2139_s2 = inlined_call_operand.vmem [shape: f32[32,1], index: 2, kind: input, shape index: {}]   ;;  %s2140_s3 = inlined_call_operand.vmem [shape: f32[32,2], index: 3, kind: input, shape index: {}]   ;;  %s2141_s4 = inlined_call_operand.vmem [shape: f32[32,2], index: 4, kind: input, shape index: {}]   ;;  %s2142_s5 = inlined_call_operand.hbm [shape: f32[2,32,256], index: 5, kind: output, shape index: {0}]   ;;  %s2143_s6 = inlined_call_operand.hbm [shape: f32[2,2,256], index: 6, kind: output, shape index: {1}]  }
   0x1   :  { %14 = vsyncpa [#allocation3 + $0x1], 0 }
   0x2   :  { %15 = vsyncpa [#allocation5], 0 }
   0x3   :  { %17 = vsyncpa [#allocation5 + $0x1], 0  ;;  %s1724_s21 = smov 0   ;;  %s1726_s22 = smov 0  }
   0x4   :  { %s1728_s23 = smov 0   ;;  %s1730_s24 = smov 0  }
   0x5 LB: > { %s1745_s25 = sadd.s32 4294967295, %s1680_s24   ;;  %s1400_s26 = sadd.s32 4294967294, %s1680_s24   ;;  %s1680_s24 = sphi %s1730_s24, %s2149_s24   ;;  %s1676_s23 = sphi %s1728_s23, %s2148_s23   ;;  %s1672_s22 = sphi %s1726_s22, %s2147_s22   ;;  %s1668_s21 = sphi %s1724_s21, %s2146_s21  }
   0x6   : > { %s1749_s27 = sadd.s32 1, %s1680_s24   ;;  %s140_s28 = sadd.s32 1, %s1676_s23 }
   0x7   : > { %s137_s29 = ssub.s32 %s1680_s24, %s1749_s27  ;;  %p150_p0 = scmp.ne.s32.totalorder %s1676_s23, %s1672_s22 }
   0x8   : > { %p138_p1 = scmp.eq.s32.totalorder %s137_s29, 0  ;;  %p151_p2 = scmp.eq.s32.totalorder %s1745_s25, 1 }
   0x9   : > { %p156_p3 = scmp.ne.s32.totalorder %s1672_s22, %s1668_s21  ;;  %p157_p4 = scmp.eq.s32.totalorder %s1400_s26, 1 }
   0xa   : > { %s1760_s30 = scalar_select %p138_p1, %s1676_s23, %s140_s28  }
   0xb   : > { %p1762_p5 = por %p151_p2, %p150_p0  ;;  %p1766_p6 = por %p157_p4, %p156_p3 }
   0xc   : > { %p1403_p7 = scmp.ge.s32.totalorder %s1680_s24, 1  ;;  %p221_p8 = scmp.lt.s32.totalorder %s1680_s24, 3 }
   0xe   : > { %p222_p9 = pnand %p1403_p7, %p221_p8 }
   0xf   : > { %p256_p10 = scmp.lt.s32.totalorder (!%p222_p9), %s1745_s25, 1  ;;  %v271_v0 = vld [vmem:[%s2138_s1] sm:$0xff] (!%p222_p9)  ;;  %vm299_vm0 = vcmask (!%p222_p9), 293888   ;;  %v272_v1 = vld [vmem:[%s2138_s1 + $0x8] sm:$0xff] (!%p222_p9)  ;;  %v1682_v2 = vmov (!%p222_p9), 0.0   ;;  %v273_v5 = vld [vmem:[%s2138_s1 + $0x10] sm:$0xff] (!%p222_p9) }
  0x10   : > { %225 = sbr.rel (%p222_p9) target bundleno = 708 (0x2c4), region = 40  ;;  %393 = vmatprep.mubr.f32.mxu1 (!%p222_p9), %v1682_v2  ;;  %772 = vmatprep.mubr.f32.mxu0 (!%p222_p9), %v1682_v2  ;;  %v301_v3 = vsel (!%p222_p9), %vm299_vm0, %v271_v0, 0  ;;  %v304_v4 = vsel (!%p222_p9), %vm299_vm0, %v272_v1, 0  ;;  %v274_v6 = vld [vmem:[%s2138_s1 + $0x18] sm:$0xff] (!%p222_p9)  ;;  %v275_v7 = vld [vmem:[%s2139_s2] sm:$0xff] (!%p222_p9)  ;;  %v307_v10 = vsel (!%p222_p9), %vm299_vm0, %v273_v5, 0 }
  0x11   : > { %v1791_v8 = vand.u32 (!%p222_p9), 4294901760, %v301_v3  ;;  %v1793_v9 = vand.u32 (!%p222_p9), 4294901760, %v304_v4  ;;  %v310_v11 = vsel (!%p222_p9), %vm299_vm0, %v274_v6, 0  ;;  %v1683_v12 = vmov (!%p222_p9), 0   ;;  %v277_v14 = vld [vmem:[%s2139_s2 + $0x10] sm:$0xff] (!%p222_p9)  ;;  %v276_v18 = vld [vmem:[%s2139_s2 + $0x8] sm:$0xff] (!%p222_p9) }
  0x12   : > { %1568 = vset.pattern.permute.xlu0 (!%p222_p9), %v1683_v12  ;;  %1569 = vset.pattern.permute.xlu1 (!%p222_p9), %v1683_v12  ;;  %v1795_v13 = vand.u32 (!%p222_p9), 4294901760, %v307_v10  ;;  %v1806_v17 = vand.u32 (!%p222_p9), 4294901760, %v310_v11  ;;  %v278_v19 = vld [vmem:[%s2139_s2 + $0x18] sm:$0xff] (!%p222_p9)  ;;  %vm312_vm1 = vcmask (!%p222_p9), 1043456   ;;  %vm1083_vm2 = vcmask (!%p222_p9), 15360   ;;  %s2036_s16 = sand.u32 (!%p222_p9), 1, %s1672_s22  }
  0x13   : > { %281 = vperm.xlu0 (!%p222_p9), %1568, %v275_v7   ;;  %v1801_v15 = vsub.f32 (!%p222_p9), %v301_v3, %v1791_v8  ;;  %v1804_v16 = vsub.f32 (!%p222_p9), %v304_v4, %v1793_v9  ;;  %291 = vperm.xlu1 (!%p222_p9), %1569, %v277_v14   ;;  %s1404_s17 = sshll.u32 (!%p222_p9), %s2036_s16, 6  ;;  %s1274_s9 = scalar_lea.sflag (!%p222_p9), [#allocation3], %s2036_s16 }
  0x14   : > { %v1820_v25 = vsub.f32 (!%p222_p9), %v307_v10, %v1795_v13  ;;  %v1823_v32 = vsub.f32 (!%p222_p9), %v310_v11, %v1806_v17  ;;  %s248_s18 = scalar_lea.vmem (!%p222_p9), [#allocation2], %s1404_s17  ;;  %s1684_s11 = smov (!%p222_p9), [#allocation2]  }
  0x15   : > { %v396_v20 = vand.u32 (!%p222_p9), 4294901760, %v1801_v15  ;;  %v407_v24 = vand.u32 (!%p222_p9), 4294901760, %v1804_v16  ;;  %s1292_s20 = sshll.u32 (!%p222_p9), %s248_s18, 4  ;;  %s1590_s12 = sshll.u32 (!%p222_p9), %s1684_s11, 4  ;;  %s2059_s20 = int_to_ptr.vmem [resolvable:$true] %s1292_s20  ;;  %s1591_s12 = int_to_ptr.vmem [resolvable:$false] %s1590_s12 }
  0x16   : > { %v418_v56 = vand.u32 (!%p222_p9), 4294901760, %v1820_v25  ;;  %s1586_s10 = scalar_lea.vmem (!%p222_p9), %s2059_s20, 1024  ;;  %s1592_s13 = scalar_lea.vmem (!%p222_p9), %s1591_s12, 2048 }
  0x17   : > { %s257_s19 = scalar_select %p256_p10, %s1745_s25, 1  ;;  %286 = vperm.xlu0 %1568, %v276_v18   ;;  %296 = vperm.xlu1 %1569, %v278_v19   ;;  %v1828_v38 = vsub.f32 %v1801_v15, %v396_v20  ;;  %v408_v55 = vsub.f32 %v1804_v16, %v407_v24 }
  0x18   : > { %p1587_p11 = scmp.ne.s32.totalorder %s2059_s20, %s1586_s10  ;;  %p1593_p0 = scmp.lt.s32.totalorder %s2059_s20, %s1591_s12 }
  0x19   : > { %s1518_s28 = smul.u32 80, %s257_s19  ;;  %v398_v60 = vand.u32 4294901760, %v1828_v38  ;;  %s1420_s19 = sshll.u32 %s1745_s25, 10 }
  0x1a   : > { %s2057_s29 = scalar_lea.hbm %s2142_s5, %s1420_s19  ;;  %p1588_p12 = pnand %p1587_p11, %p1762_p5 }
  0x1b   : > { %s260_s14 = scalar_lea.vmem %s2137_s0, %s1518_s28  ;;  %p1594_p1 = scmp.lt.s32.totalorder %s1592_s13, %s1586_s10 }
  0x1c   : > { %v262_v21 = vld [vmem:[%s260_s14 + $0x8] sm:$0xff]  ;;  %v264_v22 = vld [vmem:[%s260_s14 + $0x18] sm:$0xff]  ;;  %v261_v23 = vld [vmem:[%s260_s14] sm:$0xff]  ;;  %p1589_p13 = pneg %p1588_p12 }
  0x1d   : > { %v319_v26 = vand.u32 4294901760, %v262_v21  ;;  %v323_v27 = vand.u32 4294901760, %v264_v22  ;;  %v263_v28 = vld [vmem:[%s260_s14 + $0x10] sm:$0xff]  ;;  %v321_v29 = vand.u32 4294901760, %v261_v23  ;;  %v266_v30 = vld [vmem:[%s260_s14 + $0x28] sm:$0xff]  ;;  %v268_v31 = vld [vmem:[%s260_s14 + $0x38] sm:$0xff]  ;;  %p1595_p2 = por %p1594_p1, %p1593_p0 }
  0x1e   : > { %v325_v33 = vand.u32 4294901760, %v263_v28  ;;  %v327_v34 = vand.u32 4294901760, %v266_v30  ;;  %v331_v35 = vand.u32 4294901760, %v268_v31  ;;  %v265_v36 = vld [vmem:[%s260_s14 + $0x20] sm:$0xff]  ;;  %v267_v37 = vld [vmem:[%s260_s14 + $0x30] sm:$0xff] }
  0x1f   : > { %v1830_v39 = vpack.c.bf16 %v323_v27, %v319_v26  ;;  %v1832_v40 = vsub.f32 %v262_v21, %v319_v26  ;;  %v1834_v41 = vsub.f32 %v264_v22, %v323_v27  ;;  %v1836_v42 = vsub.f32 %v261_v23, %v321_v29  ;;  %v270_v43 = vld [vmem:[%s260_s14 + $0x48] sm:$0xf]  ;;  %v269_v44 = vld [vmem:[%s260_s14 + $0x40] sm:$0xf]  ;;  %p1596_p3 = pnand %p1595_p2, %p1589_p13 }
  0x20   : > { %v1838_v45 = vpack.c.bf16 %v325_v33, %v321_v29  ;;  %v1840_v46 = vsub.f32 %v263_v28, %v325_v33  ;;  %v1842_v47 = vpack.c.bf16 %v331_v35, %v327_v34  ;;  %v1844_v48 = vsub.f32 %v266_v30, %v327_v34 }
  0x21   : > { %1423 = vmatprep.subr.bf16.mxu1 %v1830_v39  ;;  %1447 = vmatprep.subr.bf16.mxu0 %v1830_v39  ;;  %v1848_v49 = vsub.f32 %v268_v31, %v331_v35  ;;  %v329_v50 = vand.u32 4294901760, %v265_v36  ;;  %v333_v51 = vand.u32 4294901760, %v267_v37  ;;  %v317_v52 = vsel %vm312_vm1, %v270_v43, 0 }
  0x22   : > { %1425 = vmatpush1.bf16.msra.mxu1 %v1838_v45  ;;  %1449 = vmatpush1.bf16.msra.mxu0 %v1838_v45  ;;  %v314_v53 = vsel %vm312_vm1, %v269_v44, 0  ;;  %v440_v54 = vand.u32 4294901760, %v1832_v40  ;;  %v1865_v59 = vand.u32 4294901760, %v317_v52  ;;  %v452_v62 = vand.u32 4294901760, %v1834_v41 }
  0x23   : > { %1427 = vmatprep.subr.bf16.mxu1 %v1842_v47  ;;  %1451 = vmatprep.subr.bf16.mxu0 %v1842_v47  ;;  %v1861_v57 = vpack.c.bf16 %v333_v51, %v329_v50  ;;  %v1863_v58 = vsub.f32 %v265_v36, %v329_v50  ;;  %v446_v63 = vand.u32 4294901760, %v1836_v42  ;;  %v458_v0 = vand.u32 4294901760, %v1840_v46 }
  0x24   : > { %v441_v61 = vsub.f32 %v1832_v40, %v440_v54  ;;  %v1872_v1 = vsub.f32 %v267_v37, %v333_v51  ;;  %v1874_v3 = vand.u32 4294901760, %v314_v53  ;;  %v464_v4 = vand.u32 4294901760, %v1844_v48 }
  0x25   : > { %v476_v5 = vand.u32 4294901760, %v1848_v49  ;;  %v453_v7 = vsub.f32 %v1834_v41, %v452_v62  ;;  %v447_v10 = vsub.f32 %v1836_v42, %v446_v63  ;;  %v459_v11 = vsub.f32 %v1840_v46, %v458_v0 }
  0x26   : > { %1429 = vmatpush1.bf16.msra.mxu1 %v1861_v57  ;;  %1453 = vmatpush1.bf16.msra.mxu0 %v1861_v57  ;;  %v442_v6 = vand.u32 4294901760, %v441_v61  ;;  %v1886_v12 = vsub.f32 %v314_v53, %v1874_v3  ;;  %v1454_v14 = vpack.c.bf16 %v452_v62, %v440_v54  ;;  %v465_v18 = vsub.f32 %v1844_v48, %v464_v4 }
  0x27   : > { %336 = vmatprep.subr.mxu1 %v1865_v59  ;;  %715 = vmatprep.subr.mxu0 %v1865_v59  ;;  %v470_v19 = vand.u32 4294901760, %v1863_v58  ;;  %v454_v21 = vand.u32 4294901760, %v453_v7  ;;  %v448_v22 = vand.u32 4294901760, %v447_v10  ;;  %v460_v23 = vand.u32 4294901760, %v459_v11 }
  0x28   : > { %v477_v26 = vsub.f32 %v1848_v49, %v476_v5  ;;  %v466_v27 = vand.u32 4294901760, %v465_v18  ;;  %v482_v29 = vand.u32 4294901760, %v1872_v1  ;;  %v429_v30 = vand.u32 4294901760, %v1823_v32 }
  0x29   : > { %v471_v28 = vsub.f32 %v1863_v58, %v470_v19  ;;  %v1430_v31 = vpack.c.bf16 %v454_v21, %v442_v6  ;;  %v1432_v33 = vpack.c.bf16 %v460_v23, %v448_v22  ;;  %v1456_v34 = vpack.c.bf16 %v458_v0, %v446_v63 }
  0x2a   : > { %338 = vmatpush1.msra.mxu1 %v1874_v3  ;;  %717 = vmatpush1.msra.mxu0 %v1874_v3  ;;  %v478_v35 = vand.u32 4294901760, %v477_v26  ;;  %v409_v36 = vand.u32 4294901760, %v408_v55  ;;  %v483_v38 = vsub.f32 %v1872_v1, %v482_v29  ;;  %v419_v43 = vsub.f32 %v1820_v25, %v418_v56 }
  0x2b   : > { %399 = vmatmul.mubr.f32.vlgmr.msra.gmra.mrb[0].mxu1 %v398_v60  ;;  %776 = vmatmul.mubr.f32.vlgmr.msra.gmra.mrb[0].mxu0 %v396_v20  ;;  %v472_v37 = vand.u32 4294901760, %v471_v28  ;;  %v487_v50 = vsub.f32 %v317_v52, %v1865_v59  ;;  %v494_v51 = vand.u32 4294901760, %v1886_v12  ;;  %v1458_v20 = vpack.c.bf16 %v476_v5, %v464_v4 }
  0x2c   : > { %1431 = vmatprep.subr.bf16.mxu1 %v1430_v31  ;;  %1455 = vmatprep.subr.bf16.mxu0 %v1454_v14  ;;  %v1434_v44 = vpack.c.bf16 %v478_v35, %v466_v27  ;;  %v484_v53 = vand.u32 4294901760, %v483_v38  ;;  %v420_v61 = vand.u32 4294901760, %v419_v43  ;;  %v430_v52 = vsub.f32 %v1823_v32, %v429_v30 }
  0x2d   : > { %1433 = vmatpush1.bf16.msra.mxu1 %v1432_v33  ;;  %404 = vmatprep.mubr.f32.mxu1 %v1682_v2  ;;  %v488_v54 = vand.u32 4294901760, %v487_v50  ;;  %v495_v55 = vsub.f32 %v1886_v12, %v494_v51  ;;  %v1460_v62 = vpack.c.bf16 %v482_v29, %v470_v19  ;;  %v1438_v5 = vpack.c.bf16 %v1834_v41, %v1832_v40 }
  0x2e   : > { %781 = vmatprep.mubr.f32.mxu0 %v1682_v2  ;;  %1457 = vmatpush1.bf16.msra.mxu0 %v1456_v34  ;;  %v1436_v60 = vpack.c.bf16 %v484_v53, %v472_v37  ;;  %v1442_v6 = vpack.c.bf16 %v1848_v49, %v1844_v48  ;;  %v1444_v40 = vpack.c.bf16 %v1872_v1, %v1863_v58 }
  0x2f   : > { %410 = vmatmul.mubr.f32.gmra.mrb[2].mxu1 %v409_v36  ;;  %785 = vmatmul.mubr.f32.gmra.mrb[2].mxu0 %v407_v24  ;;  %v489_v63 = vsub.f32 %v487_v50, %v488_v54  ;;  %v496_v4 = vand.u32 4294901760, %v495_v55  ;;  %v431_v24 = vand.u32 4294901760, %v430_v52 }
  0x30   : > { %1435 = vmatprep.subr.bf16.mxu1 %v1434_v44  ;;  %415 = vmatprep.mubr.f32.mxu1 %v1682_v2 }
  0x31   : > { %1437 = vmatpush1.bf16.msra.mxu1 %v1436_v60  ;;  %790 = vmatprep.mubr.f32.mxu0 %v1682_v2  ;;  %v490_v0 = vand.u32 4294901760, %v489_v63  ;;  %v1072_v63 = vld [vmem:[%s2140_s3 + $0x8] sm:$0xff] }
  0x32   : > { %1459 = vmatprep.subr.bf16.mxu0 %v1458_v20 }
  0x33   : > { %421 = vmatmul.mubr.f32.gmra.mrb[4].mxu1 %v420_v61  ;;  %794 = vmatmul.mubr.f32.gmra.mrb[4].mxu0 %v418_v56  ;;  %v1440_v56 = vpack.c.bf16 %v1840_v46, %v1836_v42 }
  0x34   : > { %1461 = vmatpush1.bf16.msra.mxu0 %v1460_v62  ;;  %426 = vmatprep.mubr.f32.mxu1 %v1682_v2 }
  0x35   : > { %491 = vmatprep.subr.mxu1 %v490_v0  ;;  %799 = vmatprep.mubr.f32.mxu0 %v1682_v2  ;;  %v1071_v0 = vld [vmem:[%s2140_s3] sm:$0xff] }
  0x36   : > { %497 = vmatpush1.msra.mxu1 %v496_v4  ;;  %844 = vmatprep.subr.mxu0 %v488_v54 }
  0x37   : > { %432 = vmatmul.mubr.f32.gmra.mrb[6].mxu1 %v431_v24  ;;  %803 = vmatmul.mubr.f32.gmra.mrb[6].mxu0 %v429_v30 }
  0x38   : > { %848 = vmatpush1.msra.mxu0 %v494_v51  ;;  %552 = vmatprep.mubr.f32.mxu1 %v1682_v2 }
  0x39   : > { %903 = vmatprep.mubr.f32.mxu0 %v1682_v2  ;;  %1439 = vmatprep.subr.bf16.mxu1 %v1438_v5 }
  0x3a   : > { %1463 = vmatprep.subr.bf16.mxu0 %v1830_v39 }
  0x3b   : > { %554 = vmatmul.mubr.f32.vlgmr.msra.gmra.mrb[0].mxu1 %v1791_v8  ;;  %905 = vmatmul.mubr.f32.vlgmr.msra.gmra.mrb[0].mxu0 %v1791_v8 }
  0x3c   : > { %1441 = vmatpush1.bf16.msra.mxu1 %v1440_v56  ;;  %559 = vmatprep.mubr.f32.mxu1 %v1682_v2 }
  0x3d   : > { %910 = vmatprep.mubr.f32.mxu0 %v1682_v2  ;;  %1465 = vmatpush1.bf16.msra.mxu0 %v1838_v45 }
  0x3e   : > { %1443 = vmatprep.subr.bf16.mxu1 %v1442_v6  ;;  %1467 = vmatprep.subr.bf16.mxu0 %v1842_v47 }
  0x3f   : > { %561 = vmatmul.mubr.f32.gmra.mrb[2].mxu1 %v1793_v9  ;;  %912 = vmatmul.mubr.f32.gmra.mrb[2].mxu0 %v1793_v9 }
  0x40   : > { %566 = vmatprep.mubr.f32.mxu1 %v1682_v2  ;;  %1445 = vmatpush1.bf16.msra.mxu1 %v1444_v40  ;;  %v1073_v40 = vld [vmem:[%s2140_s3 + $0x10] sm:$0xff] }
  0x41   : > { %917 = vmatprep.mubr.f32.mxu0 %v1682_v2  ;;  %1469 = vmatpush1.bf16.msra.mxu0 %v1861_v57 }
  0x42   : > { %607 = vmatprep.subr.mxu1 %v487_v50  ;;  %949 = vmatprep.subr.mxu0 %v1865_v59 }
  0x43   : > { %568 = vmatmul.mubr.f32.gmra.mrb[4].mxu1 %v1795_v13  ;;  %919 = vmatmul.mubr.f32.gmra.mrb[4].mxu0 %v1795_v13 }
  0x44   : > { %573 = vmatprep.mubr.f32.mxu1 %v1682_v2  ;;  %924 = vmatprep.mubr.f32.mxu0 %v1682_v2 }
  0x45   : > { %610 = vmatpush1.msra.mxu1 %v1886_v12  ;;  %951 = vmatpush1.msra.mxu0 %v1874_v3 }
  0x47   : > { %575 = vmatmul.mubr.f32.gmra.mrb[6].mxu1 %v1806_v17  ;;  %926 = vmatmul.mubr.f32.gmra.mrb[6].mxu0 %v1806_v17 }
  0x48   : > { %665 = vmatprep.mubr.f32.mxu1 %v1682_v2  ;;  %1006 = vmatprep.mubr.f32.mxu0 %v1682_v2 }
  0x4b   : > { %668 = vmatmul.mubr.f32.vlgmr.msra.gmra.mrb[0].mxu1 %v1801_v15  ;;  %1008 = vmatmul.mubr.f32.vlgmr.msra.gmra.mrb[0].mxu0 %v1791_v8 }
  0x4c   : > { %673 = vmatprep.mubr.f32.mxu1 %v1682_v2  ;;  %1013 = vmatprep.mubr.f32.mxu0 %v1682_v2 }
  0x4f   : > { %676 = vmatmul.mubr.f32.gmra.mrb[2].mxu1 %v1804_v16  ;;  %1015 = vmatmul.mubr.f32.gmra.mrb[2].mxu0 %v1793_v9 }
  0x50   : > { %681 = vmatprep.mubr.f32.mxu1 %v1682_v2  ;;  %1020 = vmatprep.mubr.f32.mxu0 %v1682_v2 }
  0x53   : > { %684 = vmatmul.mubr.f32.gmra.mrb[4].mxu1 %v1820_v25  ;;  %1022 = vmatmul.mubr.f32.gmra.mrb[4].mxu0 %v1795_v13 }
  0x54   : > { %689 = vmatprep.mubr.f32.mxu1 %v1682_v2  ;;  %1027 = vmatprep.mubr.f32.mxu0 %v1682_v2 }
  0x57   : > { %692 = vmatmul.mubr.f32.gmra.mrb[6].mxu1 %v1823_v32  ;;  %1029 = vmatmul.mubr.f32.gmra.mrb[6].mxu0 %v1806_v17 }
  0x92   : > { %v282_v8 = vpop.permute.xlu0 %281  ;;  %v292_v25 = vpop.permute.xlu1 %291 }
  0x96   : > { %v287_v46 = vpop.permute.xlu0 %286  ;;  %v297_v23 = vpop.permute.xlu1 %296 }
 0x11e   : > { %v669_v15 = vpop.f32.mrb[0].mxu1  ;;  %v1009_v16 = vpop.f32.mrb[0].mxu0 }
 0x11f   : > { %v1470_v9 = vadd.f32 %v669_v15, %v282_v8  ;;  %v671_v39 = vpop.f32.mrb[1].mxu1  ;;  %v1011_v41 = vpop.f32.mrb[1].mxu0 }
 0x120   : > { %v1472_v42 = vadd.f32 %v671_v39, %v282_v8 }
 0x121   : > { %v1471_v45 = vadd.f32 %v1470_v9, %v1009_v16 }
 0x122   : > { %v1473_v47 = vadd.f32 %v1472_v42, %v1011_v41  ;;  %v677_v13 = vpop.f32.mrb[2].mxu1  ;;  %v1016_v48 = vpop.f32.mrb[2].mxu0 }
 0x123   : > { %v1963_v49 = vmax.f32 %v1471_v45, 0.0  ;;  %v1474_v2 = vadd.f32 %v677_v13, %v287_v46  ;;  %v679_v57 = vpop.f32.mrb[3].mxu1  ;;  %v1018_v32 = vpop.f32.mrb[3].mxu0 }
 0x124   : > { %v1965_v58 = vmax.f32 %v1473_v47, 0.0  ;;  %v1476_v17 = vadd.f32 %v679_v57, %v287_v46  ;;  %v1074_v46 = vld [vmem:[%s2140_s3 + $0x18] sm:$0xff] }
 0x125   : > { %v1475_v59 = vadd.f32 %v1474_v2, %v1016_v48 }
 0x126   : > { %v1477_v1 = vadd.f32 %v1476_v17, %v1018_v32  ;;  %v685_v3 = vpop.f32.mrb[4].mxu1  ;;  %v1023_v7 = vpop.f32.mrb[4].mxu0  ;;  %v1043_v10 = vadd.f32 %v1965_v58, %v1963_v49  ;;  %v1059_v29 = vmax.f32 %v1963_v49, %v1965_v58 }
 0x127   : > { %v1969_v11 = vmax.f32 %v1475_v59, 0.0  ;;  %v1478_v12 = vadd.f32 %v685_v3, %v292_v25  ;;  %v687_v14 = vpop.f32.mrb[5].mxu1  ;;  %v1025_v18 = vpop.f32.mrb[5].mxu0 }
 0x128   : > { %v1971_v19 = vmax.f32 %v1477_v1, 0.0  ;;  %v1480_v21 = vadd.f32 %v687_v14, %v292_v25  ;;  %1044 = vadd.xlane.f32.xlu0 %v1043_v10 }
 0x129   : > { %v1479_v22 = vadd.f32 %v1478_v12, %v1023_v7 }
 0x12a   : > { %v1481_v26 = vadd.f32 %v1480_v21, %v1025_v18  ;;  %v693_v27 = vpop.f32.mrb[6].mxu1  ;;  %v1030_v28 = vpop.f32.mrb[6].mxu0  ;;  %v1046_v30 = vadd.f32 %v1971_v19, %v1969_v11  ;;  %v1062_v44 = vmax.f32 %v1969_v11, %v1971_v19 }
 0x12b   : > { %v1977_v31 = vmax.f32 %v1479_v22, 0.0  ;;  %v1482_v33 = vadd.f32 %v693_v27, %v297_v23  ;;  %v695_v34 = vpop.f32.mrb[7].mxu1  ;;  %v1032_v35 = vpop.f32.mrb[7].mxu0 }
 0x12c   : > { %v1979_v36 = vmax.f32 %v1481_v26, 0.0  ;;  %v1484_v37 = vadd.f32 %v695_v34, %v297_v23  ;;  %1060 = vmax.xlane.f32.xlu0 %v1059_v29  ;;  %1047 = vadd.xlane.f32.xlu1 %v1046_v30 }
 0x12d   : > { %v1483_v38 = vadd.f32 %v1482_v33, %v1030_v28 }
 0x12e   : > { %v1485_v43 = vadd.f32 %v1484_v37, %v1032_v35  ;;  %v1049_v50 = vadd.f32 %v1979_v36, %v1977_v31  ;;  %v1065_v20 = vmax.f32 %v1977_v31, %v1979_v36 }
 0x12f   : > { %v1985_v51 = vmax.f32 %v1483_v38, 0.0 }
 0x130   : > { %v1987_v53 = vmax.f32 %v1485_v43, 0.0  ;;  %1063 = vmax.xlane.f32.xlu1 %v1062_v44  ;;  %1050 = vadd.xlane.f32.xlu0 %v1049_v50  ;;  %v1076_v50 = vld [vmem:[%s2141_s4 + $0x8] sm:$0xff] }
 0x132   : > { %v1052_v54 = vadd.f32 %v1987_v53, %v1985_v51  ;;  %v1068_v55 = vmax.f32 %v1985_v51, %v1987_v53 }
 0x134   : > { %1066 = vmax.xlane.f32.xlu1 %v1065_v20  ;;  %1053 = vadd.xlane.f32.xlu0 %v1052_v54  ;;  %v1075_v20 = vld [vmem:[%s2141_s4] sm:$0xff] }
 0x138   : > { %1069 = vmax.xlane.f32.xlu0 %v1068_v55 }
 0x1b5   : > { %v1045_v60 = vpop.xlane.xlu0 %1044 }
 0x1b6   : > { %v1055_v61 = vmul.f32 0.00390625, %v1045_v60  ;;  %v1077_v60 = vld [vmem:[%s2141_s4 + $0x10] sm:$0xff] }
 0x1b8   : > { %v1079_v5 = vmul.f32 %v1071_v0, %v1055_v61 }
 0x1b9   : > { %v1061_v52 = vpop.xlane.xlu0 %1060  ;;  %v1048_v62 = vpop.xlane.xlu1 %1047 }
 0x1ba   : > { %v1056_v4 = vmul.f32 0.00390625, %v1048_v62  ;;  %v1114_v16 = vmul.f32 %v1071_v0, %v1061_v52  ;;  %v1084_v41 = vsel %vm1083_vm2, %v1079_v5, 0.0 }
 0x1bc   : > { %v1080_v24 = vmul.f32 %v1072_v63, %v1056_v4  ;;  %v1118_v57 = vsel %vm1083_vm2, %v1114_v16, 0.0 }
 0x1bd   : > { %v1064_v56 = vpop.xlane.xlu1 %1063  ;;  %v1051_v6 = vpop.xlane.xlu0 %1050 }
 0x1be   : > { %v1115_v8 = vmul.f32 %v1072_v63, %v1064_v56  ;;  %v1057_v15 = vmul.f32 0.00390625, %v1051_v6  ;;  %v1085_v9 = vsel %vm1083_vm2, %v1080_v24, 0.0  ;;  %v1078_v56 = vld [vmem:[%s2141_s4 + $0x18] sm:$0xff] }
 0x1bf   : > { %v1086_v2 = vadd.f32 %v1085_v9, %v1084_v41 }
 0x1c0   : > { %v1081_v39 = vmul.f32 %v1073_v40, %v1057_v15  ;;  %v1119_v25 = vsel %vm1083_vm2, %v1115_v8, 0.0 }
 0x1c1   : > { %v1067_v42 = vpop.xlane.xlu1 %1066  ;;  %v1054_v45 = vpop.xlane.xlu0 %1053  ;;  %v1120_v59 = vadd.f32 %v1119_v25, %v1118_v57 }
 0x1c2   : > { %v1087_v47 = vsel %vm1083_vm2, %v1081_v39, 0.0  ;;  %v1116_v13 = vmul.f32 %v1073_v40, %v1067_v42  ;;  %v1058_v48 = vmul.f32 0.00390625, %v1054_v45 }
 0x1c3   : > { %v1088_v1 = vadd.f32 %v1087_v47, %v1086_v2 }
 0x1c4   : > { %v1121_v32 = vsel %vm1083_vm2, %v1116_v13, 0.0  ;;  %v1082_v17 = vmul.f32 %v1074_v46, %v1058_v48 }
 0x1c5   : > { %v1070_v3 = vpop.xlane.xlu0 %1069  ;;  %v1122_v12 = vadd.f32 %v1121_v32, %v1120_v59 }
 0x1c6   : > { %v1089_v7 = vsel %vm1083_vm2, %v1082_v17, 0.0  ;;  %v1117_v10 = vmul.f32 %v1074_v46, %v1070_v3 }
 0x1c7   : > { %v1090_v14 = vadd.f32 %v1089_v7, %v1088_v1 }
 0x1c8   : > { %v1123_v18 = vsel %vm1083_vm2, %v1117_v10, 0.0 }
 0x1c9   : > { %v1091_v21 = vrot.slane %v1090_v14, 4  ;;  %v1124_v22 = vadd.f32 %v1123_v18, %v1122_v12 }
 0x1cb   : > { %v1092_v23 = vadd.f32 %v1091_v21, %v1090_v14  ;;  %v1125_v26 = vrot.slane %v1124_v22, 4 }
 0x1cd   : > { %v1093_v27 = vrot.slane %v1092_v23, 2  ;;  %v1126_v28 = vadd.f32 %v1125_v26, %v1124_v22 }
 0x1cf   : > { %v1094_v29 = vadd.f32 %v1093_v27, %v1092_v23  ;;  %v1127_v30 = vrot.slane %v1126_v28, 2 }
 0x1d1   : > { %v1095_v33 = vrot.slane %v1094_v29, 1  ;;  %v1128_v34 = vadd.f32 %v1127_v30, %v1126_v28 }
 0x1d3   : > { %v1129_v35 = vrot.slane %v1128_v34, 1  ;;  %v1096_v37 = vadd.f32 %v1095_v33, %v1094_v29 }
 0x1d5   : > { %v1130_v38 = vadd.f32 %v1129_v35, %v1128_v34  ;;  %v1097_v44 = vmax.f32 %v1096_v37, 0.0 }
 0x1d7   : > { %v1131_v43 = vmax.f32 %v1130_v38, 0.0  ;;  %v1098_v63 = vmul.f32 %v1097_v44, %v1075_v20  ;;  %v1099_v24 = vmul.f32 %v1097_v44, %v1076_v50  ;;  %v1100_v5 = vmul.f32 %v1097_v44, %v1077_v60 }
 0x1d8   : > { %v1101_v15 = vmul.f32 %v1097_v44, %v1078_v56 }
 0x1d9   : > { %v1133_v54 = vmul.f32 %v1131_v43, %v1076_v50  ;;  %v1132_v55 = vmul.f32 %v1131_v43, %v1075_v20  ;;  %v1134_v62 = vmul.f32 %v1131_v43, %v1077_v60  ;;  %v1102_v4 = vsel %vm1083_vm2, %v1098_v63, 0.0 }
 0x1da   : > { %v1105_v6 = vsel %vm1083_vm2, %v1099_v24, 0.0  ;;  %v1108_v40 = vsel %vm1083_vm2, %v1100_v5, 0.0  ;;  %v1135_v8 = vmul.f32 %v1131_v43, %v1078_v56  ;;  %v1111_v9 = vsel %vm1083_vm2, %v1101_v15, 0.0 }
 0x1db   : > { %v1139_v61 = vsel %vm1083_vm2, %v1133_v54, 0.0  ;;  %v1136_v52 = vsel %vm1083_vm2, %v1132_v55, 0.0  ;;  %v1142_v0 = vsel %vm1083_vm2, %v1134_v62, 0.0 }
 0x1dc   : > { %1140 = vadd.xlane.f32.xlu0 %v1139_v61  ;;  %1137 = vadd.xlane.f32.xlu1 %v1136_v52  ;;  %v1145_v16 = vsel %vm1083_vm2, %v1135_v8, 0.0 }
 0x1e0   : > { %1143 = vadd.xlane.f32.xlu0 %v1142_v0  ;;  %1103 = vadd.xlane.f32.xlu1 %v1102_v4 }
 0x1e4   : > { %1106 = vadd.xlane.f32.xlu0 %v1105_v6  ;;  %1109 = vadd.xlane.f32.xlu1 %v1108_v40 }
 0x1e8   : > { %1146 = vadd.xlane.f32.xlu0 %v1145_v16  ;;  %1112 = vadd.xlane.f32.xlu1 %v1111_v9 }
 0x269   : > { %v1141_v39 = vpop.xlane.xlu0 %1140  ;;  %v1138_v41 = vpop.xlane.xlu1 %1137 }
 0x26d   : > { %v1144_v42 = vpop.xlane.xlu0 %1143  ;;  %v1104_v45 = vpop.xlane.xlu1 %1103 }
 0x26e   : > { %v1148_v46 = vadd.f32 %v1138_v41, %v1104_v45 }
 0x270   : > { %v1407_v25 = vmul.f32 -1.442695, %v1148_v46 }
 0x271   : > { %v1107_v47 = vpop.xlane.xlu0 %1106  ;;  %v1110_v13 = vpop.xlane.xlu1 %1109 }
 0x272   : > { %1570 = vpow2.f32 %v1407_v25  ;;  %v1149_v48 = vadd.f32 %v1141_v39, %v1107_v47  ;;  %v1150_v2 = vadd.f32 %v1144_v42, %v1110_v13 }
 0x274   : > { %v1408_v57 = vmul.f32 -1.442695, %v1149_v48  ;;  %v1409_v32 = vmul.f32 -1.442695, %v1150_v2 }
 0x275   : > { %v1147_v17 = vpop.xlane.xlu0 %1146  ;;  %v1113_v59 = vpop.xlane.xlu1 %1112 }
 0x276   : > { %1572 = vpow2.f32 %v1408_v57  ;;  %v1151_v1 = vadd.f32 %v1147_v17, %v1113_v59 }
 0x277   : > { %1574 = vpow2.f32 %v1409_v32 }
 0x278   : > { %v1410_v3 = vmul.f32 -1.442695, %v1151_v1 }
 0x27a   : > { %1576 = vpow2.f32 %v1410_v3 }
 0x27c   : > { %v1571_v7 = vpop.eup %1570 }
 0x27d   : > { %v1164_v10 = vadd.f32 1.0, %v1571_v7 }
 0x27f   : > { %1578 = vrcp.f32 %v1164_v10 }
 0x280   : > { %v1573_v12 = vpop.eup %1572 }
 0x281   : > { %v1575_v14 = vpop.eup %1574  ;;  %v1165_v18 = vadd.f32 1.0, %v1573_v12 }
 0x282   : > { %v1166_v21 = vadd.f32 1.0, %v1575_v14 }
 0x283   : > { %1580 = vrcp.f32 %v1165_v18 }
 0x284   : > { %v1577_v22 = vpop.eup %1576  ;;  %1582 = vrcp.f32 %v1166_v21 }
 0x285   : > { %v1167_v23 = vadd.f32 1.0, %v1577_v22 }
 0x287   : > { %1584 = vrcp.f32 %v1167_v23 }
 0x289   : > { %v1579_v26 = vpop.eup %1578 }
 0x28a   : > { %v2040_v27 = vmul.f32 %v1579_v26, %v1963_v49  ;;  %v2043_v28 = vmul.f32 %v1579_v26, %v1965_v58 }
 0x28c   : > { %1184 = vst [vmem:[%s248_s18] sm:$0xff] %v2040_v27  ;;  %1185 = vst [vmem:[%s248_s18 + $0x8] sm:$0xff] %v2043_v28 }
 0x28d   : > { %v1581_v29 = vpop.eup %1580 }
 0x28e   : > { %v1583_v30 = vpop.eup %1582  ;;  %v1178_v33 = vmul.f32 %v1581_v29, %v1969_v11  ;;  %v1179_v34 = vmul.f32 %v1581_v29, %v1971_v19 }
 0x28f   : > { %v1180_v35 = vmul.f32 %v1583_v30, %v1977_v31  ;;  %v1181_v49 = vmul.f32 %v1583_v30, %v1979_v36 }
 0x290   : > { %1186 = vst [vmem:[%s248_s18 + $0x10] sm:$0xff] %v1178_v33  ;;  %1187 = vst [vmem:[%s248_s18 + $0x18] sm:$0xff] %v1179_v34  ;;  %v1192_v58 = vadd.f32 %v1178_v33, %v2040_v27  ;;  %v1201_v37 = vadd.f32 %v1179_v34, %v2043_v28 }
 0x291   : > { %v1585_v38 = vpop.eup %1584  ;;  %1188 = vst [vmem:[%s248_s18 + $0x20] sm:$0xff] %v1180_v35  ;;  %1189 = vst [vmem:[%s248_s18 + $0x28] sm:$0xff] %v1181_v49  ;;  %v1235_v43 = vmax.f32 %v2040_v27, %v1180_v35  ;;  %v1244_v44 = vmax.f32 %v2043_v28, %v1181_v49 }
 0x292   : > { %v1193_v11 = vadd.f32 %v1192_v58, %v1180_v35  ;;  %v1202_v19 = vadd.f32 %v1201_v37, %v1181_v49  ;;  %v1182_v31 = vmul.f32 %v1585_v38, %v1985_v51  ;;  %v1183_v36 = vmul.f32 %v1585_v38, %v1987_v53 }
 0x294   : > { %1190 = vst [vmem:[%s248_s18 + $0x30] sm:$0xff] %v1182_v31  ;;  %1191 = vst [vmem:[%s248_s18 + $0x38] sm:$0xff] %v1183_v36  ;;  %v1194_v50 = vadd.f32 %v1193_v11, %v1182_v31  ;;  %v1203_v20 = vadd.f32 %v1202_v19, %v1183_v36  ;;  %v1236_v54 = vmax.f32 %v1178_v33, %v1182_v31 }
 0x295   : > { %v1245_v55 = vmax.f32 %v1179_v34, %v1183_v36 }
 0x296   : > { %1599 = shalt.err (!%p1596_p3)
}
 0x297   : > { %s1600_s14 = scalar_lea.hbm %s2057_s29, 1024  ;;  %s1604_s18 = scalar_lea.hbm %s2142_s5, 2048 }
 0x298   : > { %p1601_p4 = scmp.ne.s32.totalorder %s2057_s29, %s1600_s14  ;;  %p1605_p9 = scmp.lt.u32.totalorder %s2057_s29, %s2142_s5 }
 0x299   : > { %p1606_p10 = scmp.lt.u32.totalorder %s1604_s18, %s1600_s14  ;;  %p1608_p12 = scmp.lt.u32.totalorder %s1600_s14, %s2057_s29 }
 0x29a   : > { %p1602_p7 = pnand %p1601_p4, %p1762_p5 }
 0x29b   : > { %p1607_p11 = por %p1606_p10, %p1605_p9 }
 0x29c   : > { %p1603_p8 = pneg %p1602_p7 }
 0x29d   : > { %p1609_p13 = por %p1608_p12, %p1607_p11 }
 0x29f   : > { %p1610_p0 = pnand %p1609_p13, %p1603_p8 }
 0x2a1   : > { %1613 = shalt.err (!%p1610_p0)
}
 0x2a2   : > { %s1685_s28 = smov 256   ;;  %s1686_s10 = smov 16   ;;  %v1195_v51 = vrot.slane %v1194_v50, 4  ;;  %v1204_v53 = vrot.slane %v1203_v20, 4  ;;  %v1237_v60 = vmax.f32 %v1235_v43, %v1236_v54  ;;  %v1246_v61 = vmax.f32 %v1244_v44, %v1245_v55 }
 0x2a3   : > { %1519 = dma.vmem_to_hbm [thread:$0]  (%p1762_p5), %s2059_s20, 1024, %s2057_s29, %s1274_s9, %s1685_s28, %s1685_s28, %s1686_s10   ;;  %v1687_v4 = vmov 1966171168   ;;  %v1218_v5 = vlaneseq }
 0x2a4   : > { %v1196_v52 = vadd.f32 %v1195_v51, %v1194_v50  ;;  %v1205_v62 = vadd.f32 %v1204_v53, %v1203_v20  ;;  %v1238_v63 = vrot.slane %v1237_v60, 4  ;;  %v1247_v0 = vrot.slane %v1246_v61, 4  ;;  %s1405_s20 = sshll.u32 %s2036_s16, 2  ;;  %s1421_s29 = sshll.u32 %s1745_s25, 6 }
 0x2a5   : > { %v1216_v24 = vunpack.c.l.s4 %v1687_v4  ;;  %v1219_v42 = vshrl.u32 %v1218_v5, 7  ;;  %s255_s9 = scalar_lea.vmem [#allocation4], %s1405_s20  ;;  %vm1232_vm3 = vcmp.lt.s32.totalorder %v1218_v5, 256  ;;  %s2094_s14 = scalar_lea.hbm %s2143_s6, %s1421_s29 }
 0x2a6   : > { %v1197_v56 = vrot.slane %v1196_v52, 2  ;;  %v1206_v6 = vrot.slane %v1205_v62, 2  ;;  %v1239_v40 = vmax.f32 %v1237_v60, %v1238_v63  ;;  %v1248_v8 = vmax.f32 %v1246_v61, %v1247_v0  ;;  %s1309_s11 = sshll.u32 %s255_s9, 4  ;;  %s1279_s25 = scalar_lea.sflag [#allocation5], %s2036_s16  ;;  %s2096_s11 = int_to_ptr.vmem [resolvable:$true] %s1309_s11 }
 0x2a7   : > { %v1217_v41 = vunpack.c.0.s8 %v1216_v24  ;;  %s1614_s15 = scalar_lea.vmem %s2096_s11, 64  ;;  %s1688_s17 = smov [#allocation4]  }
 0x2a8   : > { %v1198_v15 = vadd.f32 %v1197_v56, %v1196_v52  ;;  %v1207_v16 = vadd.f32 %v1206_v6, %v1205_v62  ;;  %v1240_v9 = vrot.slane %v1239_v40, 2  ;;  %v1249_v39 = vrot.slane %v1248_v8, 2  ;;  %p1615_p1 = scmp.ne.s32.totalorder %s2096_s11, %s1614_s15  ;;  %s1618_s18 = sshll.u32 %s1688_s17, 4  ;;  %s1619_s18 = int_to_ptr.vmem [resolvable:$false] %s1618_s18 }
 0x2a9   : > { %v1220_v32 = vsub.s32 %v1217_v41, %v1219_v42  ;;  %s1620_s19 = scalar_lea.vmem %s1619_s18, 128  ;;  %p1621_p4 = scmp.lt.s32.totalorder %s2096_s11, %s1619_s18 }
 0x2aa   : > { %v1199_v45 = vrot.slane %v1198_v15, 1  ;;  %v1208_v46 = vrot.slane %v1207_v16, 1  ;;  %v1241_v25 = vmax.f32 %v1239_v40, %v1240_v9  ;;  %v1250_v47 = vmax.f32 %v1248_v8, %v1249_v39  ;;  %p1616_p2 = pnand %p1615_p1, %p1762_p5  ;;  %p1622_p7 = scmp.lt.s32.totalorder %s1620_s19, %s1614_s15 }
 0x2ac   : > { %v1200_v13 = vadd.f32 %v1199_v45, %v1198_v15  ;;  %v1209_v48 = vadd.f32 %v1208_v46, %v1207_v16  ;;  %v1242_v2 = vrot.slane %v1241_v25, 1  ;;  %v1251_v57 = vrot.slane %v1250_v47, 1  ;;  %p1617_p3 = pneg %p1616_p2  ;;  %p1623_p8 = por %p1622_p7, %p1621_p4 }
 0x2ae   : > { %v1210_v17 = vmul.f32 0.03125, %v1200_v13  ;;  %v1211_v59 = vmul.f32 0.03125, %v1209_v48  ;;  %v1243_v1 = vmax.f32 %v1241_v25, %v1242_v2  ;;  %v1252_v3 = vmax.f32 %v1250_v47, %v1251_v57  ;;  %p1624_p9 = pnand %p1623_p8, %p1617_p3 }
 0x2b0   : > { %v1214_v7 = vcombine.low %v1210_v17, %v1211_v59  ;;  %v1255_v10 = vcombine.low %v1243_v1, %v1252_v3 }
 0x2b2   : > { %v1221_v12 = vrot.slane %v1214_v7, %v1220_v32  ;;  %v1262_v14 = vrot.slane %v1255_v10, %v1220_v32 }
 0x2b4   : > { %v1228_v18 = vrot.slane %v1221_v12, %v1220_v32  ;;  %v1269_v21 = vrot.slane %v1262_v14, %v1220_v32 }
 0x2b6   : > { %1234 = vst.msk [vmem:[%s255_s9] ss:$2 sm:$0x3] %vm1232_vm3, %v1228_v18  ;;  %1411 = vst.msk [vmem:[%s255_s9 + $0x1] ss:$2 sm:$0x3] %vm1232_vm3, %v1269_v21 }
 0x2b7   : > { %1627 = shalt.err (!%p1624_p9)
}
 0x2b8   : > { %s1628_s16 = scalar_lea.hbm %s2094_s14, 64  ;;  %s1632_s10 = scalar_lea.hbm %s2143_s6, 128 }
 0x2b9   : > { %p1629_p10 = scmp.ne.s32.totalorder %s2094_s14, %s1628_s16  ;;  %p1633_p13 = scmp.lt.u32.totalorder %s2094_s14, %s2143_s6 }
 0x2ba   : > { %p1634_p0 = scmp.lt.u32.totalorder %s1632_s10, %s1628_s16  ;;  %p1636_p2 = scmp.lt.u32.totalorder %s1628_s16, %s2094_s14 }
 0x2bb   : > { %p1630_p11 = pnand %p1629_p10, %p1762_p5 }
 0x2bc   : > { %p1635_p1 = por %p1634_p0, %p1633_p13 }
 0x2bd   : > { %p1631_p12 = pneg %p1630_p11 }
 0x2be   : > { %p1637_p3 = por %p1636_p2, %p1635_p1 }
 0x2c0   : > { %p1638_p4 = pnand %p1637_p3, %p1631_p12 }
 0x2c2   : > { %1641 = shalt.err (!%p1638_p4)
}
 0x2c3   : > { %1520 = dma.vmem_to_hbm [thread:$0]  (%p1762_p5), %s2096_s11, 64, %s2094_s14, %s1279_s25  }
 0x2c4 PF: > { %p1530_p7 = scmp.ge.s32.totalorder %s1680_s24, 2  ;;  %s1321_s9 = sand.u32 1, %s1668_s21  }
 0x2c5   : > { %s1322_s12 = scalar_lea.sflag [#allocation3], %s1321_s9 }
 0x2c6   : > { %p1524_p8 = pnand %p1530_p7, %p1766_p6 }
 0x2c8   : > { %1659 = dma.done.wait (!%p1524_p8), %s1322_s12, 1024  }
 0x2c9   : > { %1661 = vsyncadd (!%p1524_p8), %s1322_s12, 4294966272  ;;  %s1331_s13 = scalar_lea.sflag [#allocation5], %s1321_s9 }
 0x2ca   : > { %1663 = dma.done.wait (!%p1524_p8), %s1331_s13, 64  }
 0x2cb   : > { %1665 = vsyncadd (!%p1524_p8), %s1331_s13, 4294967232  ;;  %p20_p5 = scmp.ge.s32.totalorder %s1749_s27, 4   ;;  %s2146_s21 = smov %s1672_s22 }
 0x2cc   : > { %s2147_s22 = smov %s1676_s23  ;;  %s2148_s23 = smov %s1760_s30 }
 0x2cd   : > { %s2149_s24 = smov %s1749_s27  ;;  %22 = sbr.rel (!%p20_p5) target bundleno = 5 (0x5), region = 93 }
 0x2d4   :  { %1336 = vsyncpa [#allocation3], 1 }
 0x2d5   :  { %1338 = vsyncpa [#allocation3 + $0x1], 1 }
 0x2d6   :  { %1339 = vsyncpa [#allocation5], 1 }
 0x2d7   :  { %1341 = vsyncpa [#allocation5 + $0x1], 1 }

</bundles_post_ra>
